<compile_context>
chip_gen: v7x
topology: tpu7x:2x2x1
jax: 0.10.0
libtpu: 0.0.40
codegen_flags: <defaults>
</compile_context>

<pallas_src>
import jax
import jax.numpy as jnp
from jax.experimental import pallas as pl
from jax.experimental.pallas import tpu as pltpu


# ----------------------------------------------------------------------------
# Primary forced-copy path: one direct HBM->HBM DMA for the whole array.
# ----------------------------------------------------------------------------
def _dma_copy_kernel(x_hbm_ref, o_hbm_ref, sem):
    copy = pltpu.make_async_copy(x_hbm_ref, o_hbm_ref, sem)
    copy.start()
    copy.wait()


def _identity_copy_dma(x: jax.Array) -> jax.Array:
    """Materialized identity copy via a single HBM->HBM DMA (no VMEM staging)."""
    nbytes = x.size * jnp.dtype(x.dtype).itemsize
    return pl.pallas_call(
        _dma_copy_kernel,
        out_shape=jax.ShapeDtypeStruct(x.shape, x.dtype),
        in_specs=[pl.BlockSpec(memory_space=pl.ANY)],
        out_specs=pl.BlockSpec(memory_space=pl.ANY),
        scratch_shapes=[pltpu.SemaphoreType.DMA],
        cost_estimate=pl.CostEstimate(
            flops=0, transcendentals=0, bytes_accessed=2 * nbytes),
    )(x)


# ----------------------------------------------------------------------------
# Secondary path: VMEM-staged, lane-dense, tiled, double-buffered copy.
# Kept to demonstrate the fixed tiled pipeline; the DMA path above is preferred.
# ----------------------------------------------------------------------------
def _vmem_copy_kernel(x_ref, o_ref):
    o_ref[...] = x_ref[...]


_TILE_BUDGET_BYTES = 4 * 1024 * 1024  # in+out double-buffered => <=16 MiB VMEM
_SUBLANE = {4: 8, 2: 16, 1: 32}       # sublane packing multiple per itemsize


def _sublane_multiple(dtype) -> int:
    return _SUBLANE.get(jnp.dtype(dtype).itemsize, 8)


def _pick_tile_rows(rows: int, cols: int, itemsize: int, sublane: int) -> int:
    max_rows = max(sublane,
                   (_TILE_BUDGET_BYTES // (cols * itemsize)) // sublane * sublane)
    if rows <= max_rows:
        return rows  # single full-extent block; (8,128) rule exempt on full dims
    # Prefer a tile that evenly divides rows -> unmasked full-vreg last store.
    for t in range(max_rows, sublane - 1, -sublane):
        if rows % t == 0:
            return t
    return max_rows  # rare: fall back to cdiv with a masked tail block


def _identity_copy_vmem(x: jax.Array) -> jax.Array:
    """Materialized identity copy staged through VMEM (lane-dense tiled pipeline)."""
    orig_shape = x.shape
    total = x.size
    if total == 0:
        return x

    # Flatten to (rows, cols) with cols a multiple of 128 (lane dense). If the
    # element count is not a multiple of 128, pad the flat view to a multiple
    # of 1024 and slice the result back afterwards (no (1, N) single block).
    flat = x.reshape(total)
    padded = False
    cols = None
    for c in (1024, 512, 256, 128):
        if total % c == 0:
            cols = c
            break
    if cols is None:
        cols = 1024
        flat = jnp.pad(flat, (0, (-total) % cols))
        padded = True
    rows = flat.size // cols
    x2d = flat.reshape(rows, cols)

    itemsize = jnp.dtype(x.dtype).itemsize
    sublane = _sublane_multiple(x.dtype)
    tile_rows = _pick_tile_rows(rows, cols, itemsize, sublane)
    grid = (pl.cdiv(rows, tile_rows),)

    y2d = pl.pallas_call(
        _vmem_copy_kernel,
        out_shape=jax.ShapeDtypeStruct((rows, cols), x2d.dtype),
        grid=grid,
        in_specs=[pl.BlockSpec((tile_rows, cols), lambda i: (i, 0))],
        out_specs=pl.BlockSpec((tile_rows, cols), lambda i: (i, 0)),
        compiler_params=pltpu.CompilerParams(
            # "parallel" vs "arbitrary" is near-neutral; CORE_PARALLEL would be
            # the real v7x 2-TC lever, but the preferred forced-copy path is the
            # direct HBM->HBM DMA above, so keep the portable setting here.
            dimension_semantics=("parallel",),
            vmem_limit_bytes=32 << 20,  # safe on v5e/v6e (128 MiB) and v7x (64 MiB)
        ),
        cost_estimate=pl.CostEstimate(
            flops=0, transcendentals=0,
            bytes_accessed=2 * rows * cols * itemsize),
    )(x2d)

    y = y2d.reshape(-1)
    if padded:
        y = y[:total]
    return y.reshape(orig_shape)


# ----------------------------------------------------------------------------
# Public entry point (matches torch.nn.Identity.forward semantics).
# ----------------------------------------------------------------------------
def identity(x: jax.Array, force_pallas: bool = False) -> jax.Array:
    """Pallas implementation of torch.nn.Identity: returns x unchanged.

    Default (and fastest) path performs zero HBM traffic. `force_pallas=True`
    routes through a direct HBM->HBM DMA copy kernel (used to exercise/verify
    the Pallas path, or when a materialized copy is explicitly desired).
    """
    if not force_pallas or x.size == 0:
        return x
    return _identity_copy_dma(x)


if __name__ == "__main__":
    key = jax.random.PRNGKey(0)
    # Small NCHW input consistent with the module's conv-style usage in densenet.
    x = jax.random.normal(key, (2, 4, 16, 16), dtype=jnp.float32)

    # Zero-copy dispatch path (what real callers should hit).
    y_fast = identity(x)

    # Primary forced path: single HBM->HBM DMA.
    y_dma = identity(x, force_pallas=True)
    jax.block_until_ready(y_dma)

    # Secondary path: VMEM-staged tiled copy (2048 elems -> lane-dense (2, 1024)).
    y_vmem = _identity_copy_vmem(x)
    jax.block_until_ready(y_vmem)

    # Non-multiple-of-128 element count: exercises the padded lane-dense fallback
    # and the shape-agnostic DMA path.
    x_odd = jax.random.normal(jax.random.PRNGKey(0), (3, 5, 7), dtype=jnp.float32)
    y_odd_dma = identity(x_odd, force_pallas=True)
    y_odd_vmem = _identity_copy_vmem(x_odd)
    jax.block_until_ready((y_odd_dma, y_odd_vmem))

    assert y_fast.shape == x.shape and y_fast.dtype == x.dtype
    assert y_dma.shape == x.shape and y_dma.dtype == x.dtype
    assert y_vmem.shape == x.shape and y_vmem.dtype == x.dtype
    assert bool(jnp.array_equal(y_fast, x))
    assert bool(jnp.array_equal(y_dma, x))
    assert bool(jnp.array_equal(y_vmem, x))
    assert bool(jnp.array_equal(y_odd_dma, x_odd))
    assert bool(jnp.array_equal(y_odd_vmem, x_odd))
    print("KERNEL_OK")
</pallas_src>

<mosaic_0001>
module attributes {stable_mosaic.version = 11 : i64} {
  func.func @_dma_copy_kernel(%arg0: memref<2x4x16x16xf32, #tpu.memory_space<any>>, %arg1: memref<2x4x16x16xf32, #tpu.memory_space<any>>, %arg2: memref<!tpu.dma_semaphore, #tpu.memory_space<semaphore_mem>>) attributes {dimension_semantics = [], scalar_prefetch = 0 : i64, scratch_operands = 1 : i64, tpu.core_type = #tpu.core_type<tc>} {
    tpu.enqueue_dma source(%arg0 : memref<2x4x16x16xf32, #tpu.memory_space<any>>) target(%arg1 : memref<2x4x16x16xf32, #tpu.memory_space<any>>) target_semaphore(%arg2 : memref<!tpu.dma_semaphore, #tpu.memory_space<semaphore_mem>>)
    tpu.wait_dma2 semaphore(%arg2 : memref<!tpu.dma_semaphore, #tpu.memory_space<semaphore_mem>>) src(%arg0 : memref<2x4x16x16xf32, #tpu.memory_space<any>>) dst(%arg1 : memref<2x4x16x16xf32, #tpu.memory_space<any>>)
    return
  }
}

</mosaic_0001>

<bundles_post_ra>
// kernel: tpu_custom_call.1
= control target key start
LH: loop header
LB: loop body
LE: loop exit
PB: predicated region body
PF: predicated region fallthrough
CT: control target
= control target key end

     0   :  { %s36_s6 = smov [#allocation2]   ;;  %s37_s7 = smov [#allocation3]   ;;  %s55_s0 = inlined_call_operand.hbm [shape: f32[2,4,16,16], index: 0, kind: input, shape index: {}]   ;;  %s56_s1 = inlined_call_operand.hbm [shape: f32[2,4,16,16], index: 1, kind: output, shape index: {}]  }
   0x1   :  { %s38_s8 = smov 0  }
   0x2   :  { %18 = dma.general %s55_s0, 2048, %s56_s1, %s36_s6, %s37_s7, [#allocation4], %s38_s8, 0  }
   0x3   :  { %34 = dma.done.wait [#allocation2], 2048 }
   0x4   :  { %35 = vsyncadd [#allocation2], 4294965248 }
   0x5   :  { %24 = vsyncmov [#allocation2] }
   0x8   :  { %s25_s13 = vpop.sfrf %24 }
   0x9   :  { %p30_p0 = scmp.ne.s32.totalorder %s25_s13, 0 }
   0xb   :  { %29 = shalt.err (%p30_p0)  }

</bundles_post_ra>
